<compile_context>
chip_gen: v5e
topology: v5e:2x2
jax: 0.10.0
libtpu: 0.0.40
codegen_flags: <defaults>
</compile_context>

<pallas_src>
import jax
import jax.numpy as jnp
from jax.experimental import pallas as pl
from jax.experimental.pallas import tpu as pltpu

RANSAC_REPROJ_THRESH = 0.25   # matches findHomographyKwargs['ransacReprojThreshold']
NUM_HYPOTHESES = 64           # multiple of 8 (sublane axis)
LANE = 128                    # point axis is padded to a multiple of this


# ----------------------------------------------------------------------------
# Pallas kernel: score all hypotheses against all correspondences, return the
# index of the best hypothesis.
# ----------------------------------------------------------------------------
def _make_score_kernel(thresh2):
    def _score_kernel(hp_ref, pts_ref, best_ref):
        """Inlier counting + argmax for RANSAC.

        hp_ref:   (3M, 8)  hypothesis rows, grouped [all row0 | all row1 | all row2],
                           columns 0..2 hold the 3x3 row, columns 3..7 are zero.
        pts_ref:  (8, Np)  packed points: rows = [x, y, 1, u, v, 0, 0, 0];
                           padded lanes are all-zero.
        best_ref: (1,)     int32 (SMEM): index of hypothesis with most inliers.
        """
        m = hp_ref.shape[0] // 3

        # Single fused MXU matmul: (3M, 8) @ (8, Np) -> (3M, Np).
        proj = jnp.dot(hp_ref[...], pts_ref[...],
                       preferred_element_type=jnp.float32)
        px = proj[0:m, :]
        py = proj[m:2 * m, :]
        pw = proj[2 * m:3 * m, :]

        u = pts_ref[3:4, :]          # (1, Np) broadcast over hypotheses
        v = pts_ref[4:5, :]

        # Division-free reprojection test (scale invariant in H, exact at w~0).
        du = px - u * pw
        dv = py - v * pw
        err = du * du + dv * dv
        lim = thresh2 * (pw * pw)
        # Padded lanes have px=py=pw=u=v=0, so err=lim=0 and 0 < 0 is False:
        # no explicit validity mask required.
        inlier = (err < lim).astype(jnp.float32)     # (M, Np)

        scores = jnp.sum(inlier, axis=1, keepdims=True)        # (M, 1)

        # Fused argmax (first maximum wins, like jnp.argmax).
        best_score = jnp.max(scores)
        row_id = jax.lax.broadcasted_iota(jnp.int32, scores.shape, 0)
        row_id = row_id.astype(jnp.float32)
        best_idx = jnp.min(jnp.where(scores >= best_score, row_id,
                                     jnp.float32(m)))
        best_ref[0] = best_idx.astype(jnp.int32)

    return _score_kernel


def _score_hypotheses(hp, pts, thresh2):
    """pallas_call wrapper.  Shapes are tiny -> single invocation, no grid.

    (Forward-looking, per perf review: if M grows to thousands or Np >> 128,
    add a "parallel" grid axis over hypothesis blocks so v7x's second
    TensorCore is used, and an "arbitrary" point-block axis with a pl.when
    accumulator.  At M=64, Np=128 a grid of 1 is optimal.)
    """
    vmem = pl.BlockSpec(memory_space=pltpu.MemorySpace.VMEM)
    smem = pl.BlockSpec(memory_space=pltpu.MemorySpace.SMEM)
    return pl.pallas_call(
        _make_score_kernel(thresh2),
        out_shape=jax.ShapeDtypeStruct((1,), jnp.int32),
        in_specs=[vmem, vmem],
        out_specs=smem,
    )(hp, pts)


# ----------------------------------------------------------------------------
# Plain-JAX glue: Hartley normalization, DLT via 9x9 eigh, refit.
# ----------------------------------------------------------------------------
def _dlt_rows(src, dst):
    """Build DLT constraint rows. src, dst: (K, 2) -> A: (2K, 9)."""
    x, y = src[:, 0], src[:, 1]
    u, v = dst[:, 0], dst[:, 1]
    z = jnp.zeros_like(x)
    o = jnp.ones_like(x)
    ax = jnp.stack([-x, -y, -o, z, z, z, u * x, u * y, u], axis=-1)
    ay = jnp.stack([z, z, z, -x, -y, -o, v * x, v * y, v], axis=-1)
    return jnp.concatenate([ax, ay], axis=0)


def _nullspace9(A, row_weights=None):
    """Null space of A via smallest eigenvector of the 9x9 A^T A (no SVD)."""
    if row_weights is not None:
        A = A * row_weights[:, None]
    ata = A.T @ A                                   # (9, 9) symmetric
    _, vecs = jnp.linalg.eigh(ata)                  # ascending eigenvalues
    return vecs[:, 0]


def _hartley_transform(pts):
    """Normalize points: centroid at origin, mean distance sqrt(2)."""
    c = jnp.mean(pts, axis=0)
    d = jnp.sqrt(jnp.sum((pts - c) ** 2, axis=1) + 1e-12)
    s = jnp.sqrt(2.0) / jnp.maximum(jnp.mean(d), 1e-8)
    z = jnp.zeros((), jnp.float32)
    o = jnp.ones((), jnp.float32)
    T = jnp.stack([
        jnp.stack([s, z, -s * c[0]]),
        jnp.stack([z, s, -s * c[1]]),
        jnp.stack([z, z, o]),
    ])
    return (pts - c) * s, T


class CV2RANSAC:
    """RANSAC homography estimator (Pallas-accelerated hypothesis scoring)."""

    def __init__(self, num_hypotheses=NUM_HYPOTHESES,
                 ransac_reproj_threshold=RANSAC_REPROJ_THRESH, seed=0):
        self.num_hypotheses = num_hypotheses
        self.thresh = float(ransac_reproj_threshold)
        self.seed = seed

    def __call__(self, src_kp, dest_kp):
        src_kp = jnp.asarray(src_kp, jnp.float32)    # (N, 2)
        dest_kp = jnp.asarray(dest_kp, jnp.float32)  # (N, 2)
        n = src_kp.shape[0]
        m = self.num_hypotheses
        thresh2 = self.thresh * self.thresh

        # Hartley normalization: conditions the f32 DLT eigen-solves.
        src_n, t_src = _hartley_transform(src_kp)
        dst_n, t_dst = _hartley_transform(dest_kp)
        t_dst_inv = jnp.linalg.inv(t_dst)

        # --- 1. hypothesis generation (glue) ---------------------------------
        keys = jax.random.split(jax.random.PRNGKey(self.seed), m)
        sample_idx = jax.vmap(
            lambda k: jax.random.choice(k, n, shape=(4,), replace=False)
        )(keys)                                                  # (M, 4)
        src4 = src_n[sample_idx]                                 # (M, 4, 2)
        dst4 = dst_n[sample_idx]                                 # (M, 4, 2)
        hn = jax.vmap(lambda s, d: _nullspace9(_dlt_rows(s, d)))(src4, dst4)
        Hn = hn.reshape(m, 3, 3)
        # Denormalize each candidate back to pixel space for scoring.
        H_pix = jnp.einsum('ij,bjk,kl->bil', t_dst_inv, Hn, t_src)  # (M, 3, 3)
        H_pix = H_pix.astype(jnp.float32)

        # --- 2. Pallas hot path: score all hypotheses, pick the best ---------
        np_pad = ((max(n, 1) + LANE - 1) // LANE) * LANE
        pts = jnp.zeros((8, np_pad), jnp.float32)
        pts = pts.at[0, :n].set(src_kp[:, 0])
        pts = pts.at[1, :n].set(src_kp[:, 1])
        pts = pts.at[2, :n].set(1.0)
        pts = pts.at[3, :n].set(dest_kp[:, 0])
        pts = pts.at[4, :n].set(dest_kp[:, 1])
        # rows 5..7 stay zero; padded lanes are all-zero (implicitly masked).

        # Hypotheses reordered so the kernel's single dot yields [px | py | pw]
        # as contiguous sublane groups: (M,3,3) -> (3,M,3) -> (3M,3) -> (3M,8).
        hp = jnp.transpose(H_pix, (1, 0, 2)).reshape(3 * m, 3)
        hp = jnp.pad(hp, ((0, 0), (0, 5)))

        best = _score_hypotheses(hp, pts, thresh2)[0]            # int32 scalar
        H_best = H_pix[best]                                     # (3, 3)

        # --- 3. refit on inliers of the best hypothesis (glue) ---------------
        ones = jnp.ones((n, 1), jnp.float32)
        proj = jnp.concatenate([src_kp, ones], axis=1) @ H_best.T  # (N, 3)
        pw = proj[:, 2]
        du = proj[:, 0] - dest_kp[:, 0] * pw
        dv = proj[:, 1] - dest_kp[:, 1] * pw
        inlier_w = ((du * du + dv * dv) < thresh2 * pw * pw).astype(jnp.float32)

        w2 = jnp.concatenate([inlier_w, inlier_w], axis=0)       # (2N,)
        h_ref = _nullspace9(_dlt_rows(src_n, dst_n), w2)
        H = t_dst_inv @ h_ref.reshape(3, 3) @ t_src
        H = H / jnp.where(jnp.abs(H[2, 2]) < 1e-12, 1e-12, H[2, 2])
        return H.astype(jnp.float32), None


# ----------------------------------------------------------------------------
# Demo / self-test
# ----------------------------------------------------------------------------
if __name__ == "__main__":
    key = jax.random.PRNGKey(0)
    k1, k2, k3 = jax.random.split(key, 3)

    n_pts = 32
    # Ground-truth homography: mild affine + perspective.
    H_true = jnp.array([[1.05, 0.02, 3.0],
                        [-0.03, 0.98, -2.0],
                        [1e-4, -5e-5, 1.0]], jnp.float32)

    src_kp = jax.random.uniform(k1, (n_pts, 2), jnp.float32, 0.0, 100.0)
    src_h = jnp.concatenate([src_kp, jnp.ones((n_pts, 1), jnp.float32)], axis=1)
    proj = src_h @ H_true.T
    dest_kp = proj[:, :2] / proj[:, 2:3]

    # Corrupt 6 correspondences with large outlier offsets.
    outlier_offsets = jax.random.uniform(k2, (6, 2), jnp.float32, 20.0, 60.0)
    dest_kp = dest_kp.at[:6].add(outlier_offsets)

    model = CV2RANSAC()
    H_est, _ = model(src_kp, dest_kp)
    H_est = jax.block_until_ready(H_est)

    assert H_est.shape == (3, 3)
    assert H_est.dtype == jnp.float32
    assert bool(jnp.all(jnp.isfinite(H_est)))

    print("KERNEL_OK")
</pallas_src>

<mosaic_0001>
module attributes {stable_mosaic.version = 11 : i64} {
  func.func @_score_kernel(%arg0: memref<192x8xf32, #tpu.memory_space<vmem>>, %arg1: memref<8x128xf32, #tpu.memory_space<vmem>>, %arg2: memref<1xi32, #tpu.memory_space<smem>>) attributes {dimension_semantics = [], scalar_prefetch = 0 : i64, scratch_operands = 0 : i64, tpu.core_type = #tpu.core_type<tc>} {
    %c0 = arith.constant 0 : index
    %c0_0 = arith.constant 0 : index
    %0 = vector.load %arg0[%c0, %c0_0] : memref<192x8xf32, #tpu.memory_space<vmem>>, vector<192x8xf32>
    %c0_1 = arith.constant 0 : index
    %c0_2 = arith.constant 0 : index
    %1 = vector.load %arg1[%c0_1, %c0_2] : memref<8x128xf32, #tpu.memory_space<vmem>>, vector<8x128xf32>
    %cst = arith.constant dense<0.000000e+00> : vector<192x128xf32>
    %2 = tpu.matmul %0, %1, %cst {dimension_numbers = #tpu.dot_dimension_numbers<[1], [0], [0], [1], [0, 0, 1, 1], [], []>} : vector<192x8xf32>, vector<8x128xf32>, vector<192x128xf32> -> vector<192x128xf32>
    %3 = vector.extract_strided_slice %2 {offsets = [0, 0], sizes = [64, 128], strides = [1, 1]} : vector<192x128xf32> to vector<64x128xf32>
    %4 = vector.extract_strided_slice %2 {offsets = [64, 0], sizes = [64, 128], strides = [1, 1]} : vector<192x128xf32> to vector<64x128xf32>
    %5 = vector.extract_strided_slice %2 {offsets = [128, 0], sizes = [64, 128], strides = [1, 1]} : vector<192x128xf32> to vector<64x128xf32>
    %c3 = arith.constant 3 : index
    %c0_3 = arith.constant 0 : index
    %6 = vector.load %arg1[%c3, %c0_3] : memref<8x128xf32, #tpu.memory_space<vmem>>, vector<1x128xf32>
    %c4 = arith.constant 4 : index
    %c0_4 = arith.constant 0 : index
    %7 = vector.load %arg1[%c4, %c0_4] : memref<8x128xf32, #tpu.memory_space<vmem>>, vector<1x128xf32>
    %8 = vector.broadcast %6 : vector<1x128xf32> to vector<64x128xf32>
    %9 = arith.mulf %8, %5 : vector<64x128xf32>
    %10 = arith.subf %3, %9 : vector<64x128xf32>
    %11 = vector.broadcast %7 : vector<1x128xf32> to vector<64x128xf32>
    %12 = arith.mulf %11, %5 : vector<64x128xf32>
    %13 = arith.subf %4, %12 : vector<64x128xf32>
    %14 = arith.mulf %10, %10 : vector<64x128xf32>
    %15 = arith.mulf %13, %13 : vector<64x128xf32>
    %16 = arith.addf %14, %15 : vector<64x128xf32>
    %17 = arith.mulf %5, %5 : vector<64x128xf32>
    %cst_5 = arith.constant 6.250000e-02 : f32
    %18 = vector.broadcast %cst_5 : f32 to vector<64x128xf32>
    %19 = arith.mulf %18, %17 : vector<64x128xf32>
    %20 = arith.cmpf olt, %16, %19 : vector<64x128xf32>
    %21 = arith.extui %20 : vector<64x128xi1> to vector<64x128xi32>
    %22 = arith.sitofp %21 : vector<64x128xi32> to vector<64x128xf32>
    %cst_6 = arith.constant dense<0.000000e+00> : vector<64xf32>
    %23 = vector.multi_reduction <add>, %22, %cst_6 [1] : vector<64x128xf32> to vector<64xf32>
    %24 = vector.shape_cast %23 : vector<64xf32> to vector<64x1xf32>
    %25 = vector.shape_cast %24 : vector<64x1xf32> to vector<1x64x1xf32>
    %cst_7 = arith.constant dense<0xFF800000> : vector<1xf32>
    %26 = vector.multi_reduction <maximumf>, %25, %cst_7 [1, 2] : vector<1x64x1xf32> to vector<1xf32>
    %27 = vector.shape_cast %26 : vector<1xf32> to vector<1x1x1xf32>
    %28 = vector.extract %27[0, 0, 0] : f32 from vector<1x1x1xf32>
    %29 = tpu.iota {dimensions = array<i32: 0>} : vector<64x1xi32>
    %30 = arith.sitofp %29 : vector<64x1xi32> to vector<64x1xf32>
    %31 = vector.broadcast %28 : f32 to vector<64x1xf32>
    %32 = arith.cmpf oge, %24, %31 : vector<64x1xf32>
    %cst_8 = arith.constant 6.400000e+01 : f32
    %33 = vector.broadcast %cst_8 : f32 to vector<64x1xf32>
    %34 = arith.select %32, %30, %33 : vector<64x1xi1>, vector<64x1xf32>
    %35 = vector.shape_cast %34 : vector<64x1xf32> to vector<1x64x1xf32>
    %cst_9 = arith.constant dense<0x7F800000> : vector<1xf32>
    %36 = vector.multi_reduction <minimumf>, %35, %cst_9 [1, 2] : vector<1x64x1xf32> to vector<1xf32>
    %37 = vector.shape_cast %36 : vector<1xf32> to vector<1x1x1xf32>
    %38 = vector.extract %37[0, 0, 0] : f32 from vector<1x1x1xf32>
    %39 = arith.fptosi %38 : f32 to i32
    %c0_10 = arith.constant 0 : index
    %40 = memref.load %arg2[%c0_10] : memref<1xi32, #tpu.memory_space<smem>>
    memref.store %39, %arg2[%c0_10] : memref<1xi32, #tpu.memory_space<smem>>
    return
  }
}

</mosaic_0001>

<bundles_post_ra>
// kernel: tpu_custom_call.1
= control target key start
LH: loop header
LB: loop body
LE: loop exit
PB: predicated region body
PF: predicated region fallthrough
CT: control target
= control target key end

     0   :  { %vm37_vm0 = vcmask 64512   ;;  %s637_s0 = inlined_call_operand.vmem [shape: f32[192,8], index: 0, kind: input, shape index: {}]   ;;  %s638_s1 = inlined_call_operand.vmem [shape: f32[8,128], index: 1, kind: input, shape index: {}]   ;;  %s639_s2 = inlined_call_operand.hbm [shape: s32[1], index: 2, kind: output, shape index: {}]  }
   0x1   :  { %v36_v0 = vld [vmem:[%s638_s1] sm:$0xff]  ;;  %v18_v2 = vld [vmem:[%s637_s0 + $0x30] sm:$0xff]  ;;  %v13_v5 = vld [vmem:[%s637_s0 + $0x8] sm:$0xff] }
   0x2   :  { %v12_v1 = vld [vmem:[%s637_s0] sm:$0xff]  ;;  %125 = vmatpush.msra.mxu0 %v36_v0  ;;  %427 = vmatpush.msra.mxu1 %v36_v0  ;;  %v30_v4 = vld [vmem:[%s637_s0 + $0x90] sm:$0xff]  ;;  %v19_v6 = vld [vmem:[%s637_s0 + $0x38] sm:$0xff] }
   0x3   :  { %v24_v3 = vld [vmem:[%s637_s0 + $0x60] sm:$0xff]  ;;  %428 = vmatpush.msra.mxu2 %v36_v0  ;;  %429 = vmatpush.msra.mxu3 %v36_v0 }
   0x4   :  { %395 = vmatmul.msk.f32.vlgmr.msra.gmra.mxu0 %vm37_vm0, %v12_v1  ;;  %401 = vmatmul.msk.f32.vlgmr.msra.gmra.mxu1 %vm37_vm0, %v18_v2 }
   0x5   :  { %407 = vmatmul.msk.f32.vlgmr.msra.gmra.mxu2 %vm37_vm0, %v24_v3  ;;  %413 = vmatmul.msk.f32.vlgmr.msra.gmra.mxu3 %vm37_vm0, %v30_v4 }
   0x6   :  { %7 = vsyncpa [#allocation3], 0  ;;  %v25_v7 = vld [vmem:[%s637_s0 + $0x68] sm:$0xff]  ;;  %v31_v8 = vld [vmem:[%s637_s0 + $0x98] sm:$0xff]  ;;  %s385_s11 = sshll.u32 %s639_s2, 4  ;;  %s458_s13 = smov [#allocation2]   ;;  %s386_s11 = int_to_ptr.hbm [resolvable:$true] %s385_s11 }
   0x7   :  { %v14_v9 = vld [vmem:[%s637_s0 + $0x10] sm:$0xff]  ;;  %v20_v10 = vld [vmem:[%s637_s0 + $0x40] sm:$0xff]  ;;  %v15_v13 = vld [vmem:[%s637_s0 + $0x18] sm:$0xff] }
   0x8   :  { %v26_v11 = vld [vmem:[%s637_s0 + $0x70] sm:$0xff]  ;;  %v32_v12 = vld [vmem:[%s637_s0 + $0xa0] sm:$0xff]  ;;  %v21_v14 = vld [vmem:[%s637_s0 + $0x48] sm:$0xff] }
   0x9   :  { %v27_v15 = vld [vmem:[%s637_s0 + $0x78] sm:$0xff]  ;;  %v33_v16 = vld [vmem:[%s637_s0 + $0xa8] sm:$0xff]  ;;  %v16_v17 = vld [vmem:[%s637_s0 + $0x20] sm:$0xff] }
   0xa   :  { %v22_v18 = vld [vmem:[%s637_s0 + $0x50] sm:$0xff]  ;;  %v28_v19 = vld [vmem:[%s637_s0 + $0x80] sm:$0xff]  ;;  %v17_v21 = vld [vmem:[%s637_s0 + $0x28] sm:$0xff] }
   0xb   :  { %v34_v20 = vld [vmem:[%s637_s0 + $0xb0] sm:$0xff]  ;;  %v23_v22 = vld [vmem:[%s637_s0 + $0x58] sm:$0xff]  ;;  %v29_v23 = vld [vmem:[%s637_s0 + $0x88] sm:$0xff] }
   0xc   :  { %396 = vmatmul.msk.f32.gmra.mxu0 %vm37_vm0, %v13_v5  ;;  %402 = vmatmul.msk.f32.gmra.mxu1 %vm37_vm0, %v19_v6  ;;  %v35_v24 = vld [vmem:[%s637_s0 + $0xb8] sm:$0xff]  ;;  %v584_v35 = vld [vmem:[%s638_s1 + $0x3] ss:$0 sm:$0xff]  ;;  %v593_v40 = vld [vmem:[%s638_s1 + $0x4] ss:$0 sm:$0xff] }
   0xd   :  { %408 = vmatmul.msk.f32.gmra.mxu2 %vm37_vm0, %v25_v7  ;;  %414 = vmatmul.msk.f32.gmra.mxu3 %vm37_vm0, %v31_v8 }
  0x14   :  { %397 = vmatmul.msk.f32.gmra.mxu0 %vm37_vm0, %v14_v9  ;;  %403 = vmatmul.msk.f32.gmra.mxu1 %vm37_vm0, %v20_v10 }
  0x15   :  { %409 = vmatmul.msk.f32.gmra.mxu2 %vm37_vm0, %v26_v11  ;;  %415 = vmatmul.msk.f32.gmra.mxu3 %vm37_vm0, %v32_v12 }
  0x1c   :  { %398 = vmatmul.msk.f32.gmra.mxu0 %vm37_vm0, %v15_v13  ;;  %404 = vmatmul.msk.f32.gmra.mxu1 %vm37_vm0, %v21_v14 }
  0x1d   :  { %410 = vmatmul.msk.f32.gmra.mxu2 %vm37_vm0, %v27_v15  ;;  %416 = vmatmul.msk.f32.gmra.mxu3 %vm37_vm0, %v33_v16  ;;  %v457_v16 = vmov 0.0  }
  0x24   :  { %399 = vmatmul.msk.f32.gmra.mxu0 %vm37_vm0, %v16_v17  ;;  %405 = vmatmul.msk.f32.gmra.mxu1 %vm37_vm0, %v22_v18 }
  0x25   :  { %411 = vmatmul.msk.f32.gmra.mxu2 %vm37_vm0, %v28_v19  ;;  %417 = vmatmul.msk.f32.gmra.mxu3 %vm37_vm0, %v34_v20 }
  0x2c   :  { %400 = vmatmul.msk.f32.gmra.mxu0 %vm37_vm0, %v17_v21  ;;  %406 = vmatmul.msk.f32.gmra.mxu1 %vm37_vm0, %v23_v22 }
  0x2d   :  { %412 = vmatmul.msk.f32.gmra.mxu2 %vm37_vm0, %v29_v23  ;;  %418 = vmatmul.msk.f32.gmra.mxu3 %vm37_vm0, %v35_v24 }
  0x81   :  { %v573_v25 = vpop.f32.mrf.mxu0  ;;  %v575_v26 = vpop.f32.mrf.mxu1 }
  0x88   :  { %v163_v27 = vpop.f32.mrf.mxu2  ;;  %v181_v28 = vpop.f32.mrf.mxu3 }
  0x89   :  { %v577_v29 = vpop.f32.mrf.mxu0  ;;  %v579_v30 = vpop.f32.mrf.mxu1  ;;  %v204_v41 = vmul.f32 %v584_v35, %v181_v28  ;;  %v221_v47 = vmul.f32 %v593_v40, %v181_v28  ;;  %v261_v52 = vmul.f32 %v181_v28, %v181_v28 }
  0x8b   :  { %v269_v62 = vmul.f32 0.0625, %v261_v52 }
  0x90   :  { %v166_v31 = vpop.f32.mrf.mxu2  ;;  %v184_v32 = vpop.f32.mrf.mxu3 }
  0x91   :  { %v133_v33 = vpop.f32.mrf.mxu0  ;;  %v151_v34 = vpop.f32.mrf.mxu1  ;;  %v205_v49 = vmul.f32 %v584_v35, %v184_v32  ;;  %v222_v6 = vmul.f32 %v593_v40, %v184_v32  ;;  %v262_v7 = vmul.f32 %v184_v32, %v184_v32 }
  0x92   :  { %v212_v44 = vsub.f32 %v133_v33, %v204_v41 }
  0x94   :  { %v237_v57 = vmul.f32 %v212_v44, %v212_v44 }
  0x98   :  { %v586_v36 = vpop.f32.mrf.mxu2  ;;  %v187_v37 = vpop.f32.mrf.mxu3 }
  0x99   :  { %v136_v38 = vpop.f32.mrf.mxu0  ;;  %v588_v39 = vpop.f32.mrf.mxu1  ;;  %v223_v42 = vmul.f32 %v593_v40, %v187_v37  ;;  %v206_v43 = vmul.f32 %v584_v35, %v187_v37  ;;  %v263_v55 = vmul.f32 %v187_v37, %v187_v37  ;;  %v270_v37 = vmul.f32 0.0625, %v262_v7 }
  0x9a   :  { %v213_v61 = vsub.f32 %v136_v38, %v205_v49 }
  0x9b   :  { %v231_v48 = vsub.f32 %v163_v27, %v223_v42  ;;  %v271_v2 = vmul.f32 0.0625, %v263_v55 }
  0x9c   :  { %v238_v8 = vmul.f32 %v213_v61, %v213_v61 }
  0x9d   :  { %v247_v60 = vmul.f32 %v231_v48, %v231_v48 }
  0xa0   :  { %v598_v45 = vpop.f32.mrf.mxu2  ;;  %v190_v46 = vpop.f32.mrf.mxu3 }
  0xa1   :  { %v139_v50 = vpop.f32.mrf.mxu0  ;;  %v157_v51 = vpop.f32.mrf.mxu1  ;;  %v224_v56 = vmul.f32 %v593_v40, %v190_v46  ;;  %v207_v63 = vmul.f32 %v584_v35, %v190_v46  ;;  %v264_v13 = vmul.f32 %v190_v46, %v190_v46 }
  0xa2   :  { %v214_v53 = vsub.f32 %v139_v50, %v206_v43  ;;  %v229_v54 = vsub.f32 %v157_v51, %v221_v47 }
  0xa3   :  { %v232_v3 = vsub.f32 %v166_v31, %v224_v56  ;;  %v272_v41 = vmul.f32 0.0625, %v264_v13 }
  0xa4   :  { %v239_v58 = vmul.f32 %v214_v53, %v214_v53  ;;  %v245_v59 = vmul.f32 %v229_v54, %v229_v54 }
  0xa5   :  { %v248_v19 = vmul.f32 %v232_v3, %v232_v3 }
  0xa6   :  { %v253_v0 = vadd.f32 %v245_v59, %v237_v57  ;;  %v255_v1 = vadd.f32 %v247_v60, %v239_v58 }
  0xa8   :  { %v175_v4 = vpop.f32.mrf.mxu2  ;;  %v604_v5 = vpop.f32.mrf.mxu3  ;;  %vm277_vm1 = vcmp.lt.f32.partialorder %v253_v0, %v269_v62  ;;  %vm279_vm2 = vcmp.lt.f32.partialorder %v255_v1, %v271_v2 }
  0xa9   :  { %v202_v9 = vmul.f32 %v584_v35, %v175_v4  ;;  %v219_v10 = vmul.f32 %v593_v40, %v175_v4  ;;  %v142_v11 = vpop.f32.mrf.mxu0  ;;  %v160_v12 = vpop.f32.mrf.mxu1  ;;  %v421_v17 = vsel %vm277_vm1, 1.0, %v457_v16  ;;  %v208_v18 = vmul.f32 %v584_v35, %v604_v5 }
  0xaa   :  { %v215_v14 = vsub.f32 %v142_v11, %v207_v63  ;;  %v230_v15 = vsub.f32 %v160_v12, %v222_v6  ;;  %303 = vadd.xlane.f32.xlu1 %v421_v17  ;;  %v423_v20 = vsel %vm279_vm2, 1.0, %v457_v16  ;;  %v259_v27 = vmul.f32 %v175_v4, %v175_v4 }
  0xab   :  { %v210_v21 = vsub.f32 %v573_v25, %v202_v9  ;;  %307 = vadd.xlane.f32.xlu2 %v423_v20  ;;  %v227_v24 = vsub.f32 %v151_v34, %v219_v10  ;;  %v225_v38 = vmul.f32 %v593_v40, %v604_v5  ;;  %v216_v42 = vsub.f32 %v575_v26, %v208_v18 }
  0xac   :  { %v240_v22 = vmul.f32 %v215_v14, %v215_v14  ;;  %v246_v23 = vmul.f32 %v230_v15, %v230_v15  ;;  %v267_v25 = vmul.f32 0.0625, %v259_v27  ;;  %v329_v27 = vlaneseq }
  0xad   :  { %v235_v28 = vmul.f32 %v210_v21, %v210_v21  ;;  %v243_v33 = vmul.f32 %v227_v24, %v227_v24  ;;  %v233_v55 = vsub.f32 %v586_v36, %v225_v38  ;;  %v241_v36 = vmul.f32 %v216_v42, %v216_v42 }
  0xae   :  { %v256_v31 = vadd.f32 %v248_v19, %v240_v22  ;;  %v254_v32 = vadd.f32 %v246_v23, %v238_v8 }
  0xaf   :  { %v251_v46 = vadd.f32 %v243_v33, %v235_v28  ;;  %v330_v28 = vshrl.u32 %v329_v27, 7 }
  0xb0   :  { %v178_v43 = vpop.f32.mrf.mxu2  ;;  %v196_v44 = vpop.f32.mrf.mxu3  ;;  %vm278_vm3 = vcmp.lt.f32.partialorder %v254_v32, %v270_v37  ;;  %vm280_vm4 = vcmp.lt.f32.partialorder %v256_v31, %v272_v41 }
  0xb1   :  { %v203_v47 = vmul.f32 %v584_v35, %v178_v43  ;;  %v220_v34 = vmul.f32 %v593_v40, %v178_v43  ;;  %v209_v48 = vmul.f32 %v584_v35, %v196_v44  ;;  %v226_v49 = vmul.f32 %v593_v40, %v196_v44 }
  0xb2   :  { %v266_v50 = vmul.f32 %v196_v44, %v196_v44  ;;  %vm275_vm5 = vcmp.lt.f32.partialorder %v251_v46, %v267_v25  ;;  %v422_v51 = vsel %vm278_vm3, 1.0, %v457_v16  ;;  %v260_v53 = vmul.f32 %v178_v43, %v178_v43 }
  0xb3   :  { %v211_v26 = vsub.f32 %v577_v29, %v203_v47  ;;  %v228_v52 = vsub.f32 %v588_v39, %v220_v34  ;;  %v217_v54 = vsub.f32 %v579_v30, %v209_v48  ;;  %305 = vadd.xlane.f32.xlu1 %v422_v51  ;;  %v234_v56 = vsub.f32 %v598_v45, %v226_v49 }
  0xb4   :  { %v419_v35 = vsel %vm275_vm5, 1.0, %v457_v16  ;;  %v424_v40 = vsel %vm280_vm4, 1.0, %v457_v16  ;;  %v274_v60 = vmul.f32 0.0625, %v266_v50  ;;  %v268_v39 = vmul.f32 0.0625, %v260_v53 }
  0xb5   :  { %v236_v57 = vmul.f32 %v211_v26, %v211_v26  ;;  %v244_v58 = vmul.f32 %v228_v52, %v228_v52  ;;  %v242_v59 = vmul.f32 %v217_v54, %v217_v54  ;;  %299 = vadd.xlane.f32.xlu0 %v419_v35  ;;  %309 = vadd.xlane.f32.xlu2 %v424_v40  ;;  %v331_v31 = vadd.s32 8, %v330_v28 }
  0xb6   :  { %v250_v29 = vmul.f32 %v234_v56, %v234_v56  ;;  %v265_v30 = vmul.f32 %v604_v5, %v604_v5  ;;  %v249_v45 = vmul.f32 %v233_v55, %v233_v55  ;;  %v332_v32 = vadd.s32 16, %v330_v28 }
  0xb7   :  { %v252_v61 = vadd.f32 %v244_v58, %v236_v57  ;;  %v333_v33 = vadd.s32 24, %v330_v28  ;;  %v334_v37 = vadd.s32 32, %v330_v28  ;;  %v335_v38 = vadd.s32 40, %v330_v28 }
  0xb8   :  { %v258_v62 = vadd.f32 %v250_v29, %v242_v59  ;;  %v257_v1 = vadd.f32 %v249_v45, %v241_v36  ;;  %v273_v2 = vmul.f32 0.0625, %v265_v30  ;;  %v336_v41 = vadd.s32 48, %v330_v28 }
  0xb9   :  { %vm276_vm6 = vcmp.lt.f32.partialorder %v252_v61, %v268_v39  ;;  %v337_v42 = vadd.s32 56, %v330_v28  ;;  %v338_v43 = vcvt.s32.f32 %v330_v28  ;;  %v339_v44 = vcvt.s32.f32 %v331_v31 }
  0xba   :  { %v420_v63 = vsel %vm276_vm6, 1.0, %v457_v16  ;;  %vm282_vm7 = vcmp.lt.f32.partialorder %v258_v62, %v274_v60  ;;  %vm281_vm8 = vcmp.lt.f32.partialorder %v257_v1, %v273_v2  ;;  %v340_v46 = vcvt.s32.f32 %v332_v32 }
  0xbb   :  { %v426_v0 = vsel %vm282_vm7, 1.0, %v457_v16  ;;  %v425_v3 = vsel %vm281_vm8, 1.0, %v457_v16  ;;  %v341_v25 = vcvt.s32.f32 %v333_v33  ;;  %v342_v47 = vcvt.s32.f32 %v334_v37 }
  0xbc   :  { %313 = vadd.xlane.f32.xlu1 %v426_v0  ;;  %v343_v48 = vcvt.s32.f32 %v335_v38  ;;  %v344_v49 = vcvt.s32.f32 %v336_v41  ;;  %v345_v50 = vcvt.s32.f32 %v337_v42 }
  0xbd   :  { %301 = vadd.xlane.f32.xlu0 %v420_v63 }
  0xc5   :  { %311 = vadd.xlane.f32.xlu0 %v425_v3 }
 0x11d   :  { %v304_v4 = vpop.xlane.xlu1 %303 }
 0x11e   :  { %v308_v7 = vpop.xlane.xlu2 %307 }
 0x126   :  { %v306_v5 = vpop.xlane.xlu1 %305 }
 0x128   :  { %v300_v6 = vpop.xlane.xlu0 %299  ;;  %v310_v9 = vpop.xlane.xlu2 %309 }
 0x129   :  { %v315_v13 = vmax.f32 %v300_v6, %v308_v7 }
 0x12f   :  { %v314_v10 = vpop.xlane.xlu1 %313 }
 0x130   :  { %v302_v8 = vpop.xlane.xlu0 %301  ;;  %v318_v14 = vmax.f32 %v306_v5, %v314_v10 }
 0x131   :  { %v316_v11 = vmax.f32 %v302_v8, %v310_v9 }
 0x133   :  { %v319_v17 = vmax.f32 %v315_v13, %v316_v11 }
 0x138   :  { %v312_v12 = vpop.xlane.xlu0 %311 }
 0x139   :  { %v317_v15 = vmax.f32 %v304_v4, %v312_v12 }
 0x13b   :  { %v320_v18 = vmax.f32 %v317_v15, %v318_v14 }
 0x13d   :  { %v321_v19 = vmax.f32 %v319_v17, %v320_v18 }
 0x13f   :  { %v322_v20 = vrot.slane %v321_v19, 4 }
 0x141   :  { %v323_v21 = vmax.f32 %v321_v19, %v322_v20 }
 0x143   :  { %v324_v22 = vrot.slane %v323_v21, 2 }
 0x145   :  { %v325_v16 = vmax.f32 %v323_v21, %v324_v22 }
 0x147   :  { %v326_v23 = vrot.slane %v325_v16, 1 }
 0x149   :  { %v327_v24 = vmax.f32 %v325_v16, %v326_v23 }
 0x14b   :  { %430 = vpush %v327_v24 }
 0x17c   :  { %s431_s1 = spop %430 }
 0x17d   :  { %v346_v34 = vstv %s431_s1 }
 0x17e   :  { %vm347_vm9 = vcmp.ge.f32.partialorder %v300_v6, %v346_v34  ;;  %vm348_vm10 = vcmp.ge.f32.partialorder %v302_v8, %v346_v34  ;;  %vm349_vm11 = vcmp.ge.f32.partialorder %v304_v4, %v346_v34  ;;  %vm350_vm12 = vcmp.ge.f32.partialorder %v306_v5, %v346_v34 }
 0x17f   :  { %vm351_vm13 = vcmp.ge.f32.partialorder %v308_v7, %v346_v34  ;;  %vm352_vm14 = vcmp.ge.f32.partialorder %v310_v9, %v346_v34  ;;  %vm353_vm15 = vcmp.ge.f32.partialorder %v312_v12, %v346_v34  ;;  %vm354_vm0 = vcmp.ge.f32.partialorder %v314_v10, %v346_v34 }
 0x180   :  { %v355_v51 = vsel %vm347_vm9, %v338_v43, 64.0  ;;  %v356_v26 = vsel %vm348_vm10, %v339_v44, 64.0  ;;  %v357_v52 = vsel %vm349_vm11, %v340_v46, 64.0  ;;  %v358_v53 = vsel %vm350_vm12, %v341_v25, 64.0 }
 0x181   :  { %v359_v54 = vsel %vm351_vm13, %v342_v47, 64.0  ;;  %v360_v55 = vsel %vm352_vm14, %v343_v48, 64.0  ;;  %v361_v56 = vsel %vm353_vm15, %v344_v49, 64.0  ;;  %v362_v35 = vsel %vm354_vm0, %v345_v50, 64.0 }
 0x182   :  { %v363_v40 = vmin.f32 %v355_v51, %v359_v54  ;;  %v364_v57 = vmin.f32 %v356_v26, %v360_v55  ;;  %v365_v58 = vmin.f32 %v357_v52, %v361_v56  ;;  %v366_v59 = vmin.f32 %v358_v53, %v362_v35 }
 0x184   :  { %v367_v29 = vmin.f32 %v363_v40, %v364_v57  ;;  %v368_v60 = vmin.f32 %v365_v58, %v366_v59 }
 0x186   :  { %v369_v39 = vmin.f32 %v367_v29, %v368_v60 }
 0x188   :  { %v370_v61 = vrot.slane %v369_v39, 4 }
 0x18a   :  { %v371_v62 = vmin.f32 %v369_v39, %v370_v61 }
 0x18c   :  { %v372_v30 = vrot.slane %v371_v62, 2 }
 0x18e   :  { %v373_v36 = vmin.f32 %v371_v62, %v372_v30 }
 0x190   :  { %v374_v45 = vrot.slane %v373_v36, 1 }
 0x192   :  { %v375_v63 = vmin.f32 %v373_v36, %v374_v45 }
 0x194   :  { %432 = vpush %v375_v63 }
 0x1c5   :  { %s433_s6 = spop %432 }
 0x1c6   :  { %p434_p0 = scmp.lt.s32.totalorder %s433_s6, 0  ;;  %s435_s7 = sceil.f32 %s433_s6 }
 0x1c7   :  { %s436_s8 = sfloor.f32 %s433_s6 }
 0x1c8   :  { %s641_s7 = smov (!%p434_p0, %s435_s7), %s436_s8 }
 0x1c9   :  { %s438_s12 = scvt.f32.s32 %s641_s7 }
 0x1cb   :  { %379 = sst [smem:[#allocation2]] %s438_s12 }
 0x1cc   :  { %388 = dma.smem_to_hbm %s458_s13, 16, %s386_s11, [#allocation3]  }
 0x1cd   :  { %455 = dma.done.wait [#allocation3], 16  }
 0x1ce   :  { %456 = vsyncadd [#allocation3], 4294967280 }
 0x1cf   :  { %393 = sfence }
 0x1d0   :  { %394 = vsyncpa [#allocation3], 1 }

</bundles_post_ra>
